<compile_context>
chip_gen: v5e
topology: v5e:2x2
jax: 0.10.0
libtpu: 0.0.40
codegen_flags: <defaults>
</compile_context>

<pallas_src>
import functools

import jax
import jax.numpy as jnp
from jax.experimental import pallas as pl
from jax.experimental.pallas import tpu as pltpu

_VMEM = pl.BlockSpec(memory_space=pltpu.MemorySpace.VMEM)
_LANE = 128


def _round_up(n, k):
    return ((n + k - 1) // k) * k


def _vmem_limit_bytes():
    """Generation-aware scoped-VMEM budget for the fused branch kernel."""
    try:
        kind = jax.devices()[0].device_kind.lower()
    except Exception:
        kind = ""
    if "7" in kind:                      # v7x: 64 MiB physical VMEM per TC
        return 40 * 1024 * 1024
    if "v5" in kind or "v6" in kind:     # v5e/v5p/v6e: 128 MiB physical
        return 64 * 1024 * 1024
    return 32 * 1024 * 1024


# ----------------------------------------------------------------------------
# Kernels
# ----------------------------------------------------------------------------
def _ema_kernel(pk_ref, pq_ref, out_ref, *, m):
    # param_k = m * param_k + (1 - m) * param_q   (single fused elementwise pass)
    out_ref[...] = pk_ref[...] * m + pq_ref[...] * (1.0 - m)


def _fused_branch_kernel(patches_ref, wc_ref, bc_ref, wf_ref, bf_ref,
                         w1_ref, b1_ref, w2_ref, b2_ref,
                         hid_ref, q_ref):
    # patches_ref : (TB, H*W, K9)    im2col'd patches, bf16 (K9 = 9*Cin, unpadded)
    # wc_ref      : (K9, CoutP)      packed conv weight, bf16
    # bc_ref      : (1, CoutP)       conv bias, f32
    # wf_ref      : (CoutP, HIDP)    FC weight with 1/(H*W) folded in, bf16
    # bf_ref      : (1, HIDP)        FC bias, f32
    # w1/b1/w2/b2 : projection head (lane-padded), bf16 / f32
    # hid_ref     : (TB, HIDP)       encoder hidden features, f32 (lane-dense)
    # q_ref       : (TB, DIMP)       L2-normalized projection, f32 (lane-dense)
    TB, HW, K9 = patches_ref.shape
    CoutP = wc_ref.shape[1]

    # 3x3 "same" conv as one im2col matmul on the MXU (M = TB*HW).
    patches = patches_ref[...].reshape(TB * HW, K9)
    acc = jnp.dot(patches, wc_ref[...], preferred_element_type=jnp.float32)
    # bias + ReLU in f32 on the VPU (correctness-first; v5e has no bf16 VALU).
    acc = jnp.maximum(acc + bc_ref[...], 0.0)

    # global average pool as a sum; the 1/(H*W) scale is folded into wf.
    pooled = jnp.sum(acc.reshape(TB, HW, CoutP), axis=1)          # (TB, CoutP)

    hidden = jnp.dot(pooled.astype(jnp.bfloat16), wf_ref[...],
                     preferred_element_type=jnp.float32) + bf_ref[...]
    hid_ref[...] = hidden                                          # lane-dense store

    # Projection head FC -> ReLU -> FC fused with F.normalize(., p=2, dim=1).
    h = jnp.maximum(
        jnp.dot(hidden.astype(jnp.bfloat16), w1_ref[...],
                preferred_element_type=jnp.float32) + b1_ref[...], 0.0)
    z = (jnp.dot(h.astype(jnp.bfloat16), w2_ref[...],
                 preferred_element_type=jnp.float32) + b2_ref[...])
    # rsqrt on the EUP + multiply instead of sqrt + divide.
    inv = jax.lax.rsqrt(jnp.maximum(jnp.sum(z * z, axis=1, keepdims=True), 1e-24))
    q_ref[...] = z * inv


# ----------------------------------------------------------------------------
# Momentum (EMA) update: per-leaf, tiled/pipelined for big leaves
# ----------------------------------------------------------------------------
_EMA_ROW_TILE = 512


def _ema_leaf(pk, pq, m):
    orig_shape = pk.shape
    if pk.ndim < 2:
        pk2, pq2 = pk.reshape(1, -1), pq.reshape(1, -1)
    else:
        pk2 = pk.reshape(-1, orig_shape[-1])
        pq2 = pq.reshape(-1, orig_shape[-1])
    rows, cols = pk2.shape
    kern = functools.partial(_ema_kernel, m=m)

    if rows >= 2 * _EMA_ROW_TILE:
        # Row-tiled grid -> DMA/compute pipelining for large parameter leaves.
        new = pl.pallas_call(
            kern,
            out_shape=jax.ShapeDtypeStruct((rows, cols), pk.dtype),
            grid=(pl.cdiv(rows, _EMA_ROW_TILE),),
            in_specs=[pl.BlockSpec((_EMA_ROW_TILE, cols), lambda i: (i, 0)),
                      pl.BlockSpec((_EMA_ROW_TILE, cols), lambda i: (i, 0))],
            out_specs=pl.BlockSpec((_EMA_ROW_TILE, cols), lambda i: (i, 0)),
            input_output_aliases={0: 0},            # update param_k in place
            compiler_params=pltpu.CompilerParams(
                dimension_semantics=("parallel",)),
        )(pk2, pq2)
    else:
        new = pl.pallas_call(
            kern,
            out_shape=jax.ShapeDtypeStruct((rows, cols), pk.dtype),
            in_specs=[_VMEM, _VMEM],
            out_specs=_VMEM,
            input_output_aliases={0: 0},
        )(pk2, pq2)
    return new.reshape(orig_shape)


def momentum_update(params_k, params_q, m):
    return jax.tree_util.tree_map(lambda pk, pq: _ema_leaf(pk, pq, m),
                                  params_k, params_q)


# ----------------------------------------------------------------------------
# Parameter packing / im2col (wrapper-side layout plumbing, plain XLA)
# ----------------------------------------------------------------------------
def _pad_last(x, target):
    pad = target - x.shape[-1]
    if pad == 0:
        return x
    return jnp.pad(x, [(0, 0)] * (x.ndim - 1) + [(0, pad)])


def _pack_branch(enc, head, HW):
    # NOTE: conv_w layout here is (3, 3, cin, cout); weights imported from
    # PyTorch's (cout, cin, 3, 3) would need a transpose first.
    cin, cout = enc["conv_w"].shape[2], enc["conv_w"].shape[3]
    hid, dim = enc["fc_w"].shape[1], head["w2"].shape[1]
    K9 = 9 * cin                                  # true contraction dim (no pad)
    CoutP = _round_up(cout, _LANE)
    HIDP = _round_up(hid, _LANE)
    DIMP = _round_up(dim, _LANE)

    wc = enc["conv_w"].reshape(K9, cout)
    wc = jnp.pad(wc, ((0, 0), (0, CoutP - cout))).astype(jnp.bfloat16)
    bc = _pad_last(enc["conv_b"], CoutP).astype(jnp.float32)
    wf = enc["fc_w"] * (1.0 / HW)                 # fold mean-pool scale
    wf = jnp.pad(wf, ((0, CoutP - cout), (0, HIDP - hid))).astype(jnp.bfloat16)
    bf = _pad_last(enc["fc_b"], HIDP).astype(jnp.float32)
    w1 = jnp.pad(head["w1"], ((0, HIDP - hid), (0, HIDP - hid))).astype(jnp.bfloat16)
    b1 = _pad_last(head["b1"], HIDP).astype(jnp.float32)
    w2 = jnp.pad(head["w2"], ((0, HIDP - hid), (0, DIMP - dim))).astype(jnp.bfloat16)
    b2 = _pad_last(head["b2"], DIMP).astype(jnp.float32)
    return (wc, bc, wf, bf, w1, b1, w2, b2), (K9, CoutP, HIDP, DIMP, hid, dim)


def _im2col(x_nchw):
    # PyTorch NCHW -> NHWC, zero-pad spatially, gather the 9 shifted windows
    # once in the wrapper so the kernel sees a (N, H*W, 9*Cin) bf16 matrix.
    x = jnp.transpose(x_nchw, (0, 2, 3, 1)).astype(jnp.float32)
    N, H, W, cin = x.shape
    xp = jnp.pad(x, ((0, 0), (1, 1), (1, 1), (0, 0)))
    wins = [xp[:, dy:dy + H, dx:dx + W, :] for dy in range(3) for dx in range(3)]
    patches = jnp.concatenate(wins, axis=-1).reshape(N, H * W, 9 * cin)
    return patches.astype(jnp.bfloat16)


def _pick_batch_tile(n, max_tile):
    for t in (max_tile, 64, 32, 16, 8):
        if t <= n and n % t == 0:
            return t
    return n                                       # tiny batch: one full block


# ----------------------------------------------------------------------------
# Fused query+key branch forward (one pallas_call, size-2 leading grid axis)
# ----------------------------------------------------------------------------
def dual_branch_forward(x_q, x_k, enc_q, head_q, enc_k, head_k,
                        max_batch_tile=64):
    """Both encoders (conv->ReLU->avgpool->FC) + heads + L2 norm, fused."""
    N, H, W = x_q.shape[0], x_q.shape[2], x_q.shape[3]
    HW = H * W
    pq, dims = _pack_branch(enc_q, head_q, HW)
    pk, _ = _pack_branch(enc_k, head_k, HW)
    K9, CoutP, HIDP, DIMP, hid, dim = dims

    stacked = tuple(jnp.stack([a, b], axis=0) for a, b in zip(pq, pk))
    patches = jnp.stack([_im2col(x_q), _im2col(x_k)], axis=0)   # (2, N, HW, K9)

    TB = _pick_batch_tile(N, max_batch_tile)
    grid = (2, N // TB)                 # branch axis first: both TCs busy on v7x

    hid_out, q_out = pl.pallas_call(
        _fused_branch_kernel,
        out_shape=(jax.ShapeDtypeStruct((2, N, HIDP), jnp.float32),
                   jax.ShapeDtypeStruct((2, N, DIMP), jnp.float32)),
        grid_spec=pltpu.PrefetchScalarGridSpec(
            num_scalar_prefetch=0,
            grid=grid,
            in_specs=[
                pl.BlockSpec((None, TB, HW, K9), lambda b, i: (b, i, 0, 0)),
                pl.BlockSpec((None, K9, CoutP), lambda b, i: (b, 0, 0)),
                pl.BlockSpec((None, 1, CoutP), lambda b, i: (b, 0, 0)),
                pl.BlockSpec((None, CoutP, HIDP), lambda b, i: (b, 0, 0)),
                pl.BlockSpec((None, 1, HIDP), lambda b, i: (b, 0, 0)),
                pl.BlockSpec((None, HIDP, HIDP), lambda b, i: (b, 0, 0)),
                pl.BlockSpec((None, 1, HIDP), lambda b, i: (b, 0, 0)),
                pl.BlockSpec((None, HIDP, DIMP), lambda b, i: (b, 0, 0)),
                pl.BlockSpec((None, 1, DIMP), lambda b, i: (b, 0, 0)),
            ],
            out_specs=(
                pl.BlockSpec((None, TB, HIDP), lambda b, i: (b, i, 0)),
                pl.BlockSpec((None, TB, DIMP), lambda b, i: (b, i, 0)),
            )),
        compiler_params=pltpu.CompilerParams(
            dimension_semantics=("parallel", "parallel"),
            vmem_limit_bytes=_vmem_limit_bytes()),
    )(patches, *stacked)

    hidden_q = hid_out[0, :, :hid]
    q = q_out[0, :, :dim]
    k = q_out[1, :, :dim]
    return hidden_q, q, k


# ----------------------------------------------------------------------------
# SuMoCoDDP forward_train (training-mode forward)
# ----------------------------------------------------------------------------
@functools.partial(jax.jit, static_argnames=("m",))
def sumoco_forward_train(state, x_q, x_k, y, *, m=0.999):
    enc_q, mlp_q = state["encoder_q"], state["mlp_q"]
    enc_k, mlp_k = state["encoder_k"], state["mlp_k"]
    queue_feats, queue_labels, queue_ptr = (
        state["queue_feats"], state["queue_labels"], state["queue_ptr"])
    K = queue_feats.shape[1]

    # __momentum_update_params_k__ (torch.no_grad); key params for the key branch
    new_k_params = momentum_update(
        {"enc": enc_k, "mlp": mlp_k},
        jax.lax.stop_gradient({"enc": enc_q, "mlp": mlp_q}), m)
    enc_k_new, mlp_k_new = new_k_params["enc"], new_k_params["mlp"]

    # query + key branches fused in one pallas_call (q uses enc_q/mlp_q,
    # k uses the freshly-updated key params; k is detached below).
    hidden_feats, q, k = dual_branch_forward(x_q, x_k, enc_q, mlp_q,
                                             enc_k_new, mlp_k_new)
    k = jax.lax.stop_gradient(k)

    # snapshot of the queue BEFORE enqueue (as in the PyTorch module)
    queue_feats_out = queue_feats.T          # (K, dim)
    queue_labels_out = queue_labels          # (K,)

    # __dequeue_and_enqueue__
    # TODO(synk): concat_all_gather assumes a single device (world_size == 1);
    # no cross-device all_gather is performed here.
    batch = k.shape[0]
    assert K % batch == 0, "queue size K must be a multiple of the batch size"
    ptr = queue_ptr[0]
    new_queue_feats = jax.lax.dynamic_update_slice(
        queue_feats, k.T, (jnp.int32(0), ptr))
    new_queue_labels = jax.lax.dynamic_update_slice(
        queue_labels, y.astype(queue_labels.dtype), (ptr,))
    new_ptr = jnp.mod(ptr + batch, K)[None].astype(queue_ptr.dtype)

    new_state = dict(state,
                     encoder_k=enc_k_new, mlp_k=mlp_k_new,
                     queue_feats=new_queue_feats,
                     queue_labels=new_queue_labels,
                     queue_ptr=new_ptr)
    outputs = (q, k, queue_feats_out, queue_labels_out,
               jax.lax.stop_gradient(hidden_feats))
    return outputs, new_state


# ----------------------------------------------------------------------------
# Deterministic parameter / buffer construction
# ----------------------------------------------------------------------------
def init_state(key, cin, cout, hid, dim, K):
    ks = jax.random.split(key, 8)
    enc_q = {
        "conv_w": 0.1 * jax.random.normal(ks[0], (3, 3, cin, cout), jnp.float32),
        "conv_b": 0.1 * jax.random.normal(ks[1], (1, cout), jnp.float32),
        "fc_w":   0.1 * jax.random.normal(ks[2], (cout, hid), jnp.float32),
        "fc_b":   0.1 * jax.random.normal(ks[3], (1, hid), jnp.float32),
    }
    mlp_q = {
        "w1": 0.1 * jax.random.normal(ks[4], (hid, hid), jnp.float32),
        "b1": 0.1 * jax.random.normal(ks[5], (1, hid), jnp.float32),
        "w2": 0.1 * jax.random.normal(ks[6], (hid, dim), jnp.float32),
        "b2": 0.1 * jax.random.normal(ks[7], (1, dim), jnp.float32),
    }
    # key nets start as copies of the query nets (__init_params_k__)
    enc_k = jax.tree_util.tree_map(lambda p: p, enc_q)
    mlp_k = jax.tree_util.tree_map(lambda p: p, mlp_q)

    qkey = jax.random.fold_in(key, 123)
    qf = jax.random.normal(qkey, (dim, K), jnp.float32)
    qf = qf / jnp.maximum(jnp.linalg.norm(qf, axis=0, keepdims=True), 1e-12)
    return {
        "encoder_q": enc_q, "encoder_k": enc_k,
        "mlp_q": mlp_q, "mlp_k": mlp_k,
        "queue_feats": qf,
        "queue_labels": jnp.zeros((K,), jnp.int32),
        "queue_ptr": jnp.zeros((1,), jnp.int32),
    }


# ----------------------------------------------------------------------------
if __name__ == "__main__":
    N, CIN, HWS = 2, 4, 16        # batch, channels, spatial
    COUT, HID, DIM, K = 32, 32, 32, 64

    key = jax.random.PRNGKey(0)
    k_state, k_xq, k_xk, k_y = jax.random.split(key, 4)

    state = init_state(k_state, CIN, COUT, HID, DIM, K)
    x_q = jax.random.normal(k_xq, (N, CIN, HWS, HWS), jnp.float32)  # NCHW like PyTorch
    x_k = jax.random.normal(k_xk, (N, CIN, HWS, HWS), jnp.float32)
    y = jax.random.randint(k_y, (N,), 0, 10, jnp.int32)

    (q, kf, qfeats, qlabels, hidden), new_state = sumoco_forward_train(
        state, x_q, x_k, y, m=0.999)

    jax.block_until_ready((q, kf, qfeats, qlabels, hidden,
                           new_state["queue_feats"], new_state["queue_ptr"]))

    assert q.shape == (N, DIM) and kf.shape == (N, DIM)
    assert qfeats.shape == (K, DIM) and qlabels.shape == (K,)
    assert hidden.shape == (N, HID)
    assert bool(jnp.allclose(jnp.linalg.norm(q, axis=1), 1.0, atol=1e-2))
    assert bool(jnp.allclose(jnp.linalg.norm(kf, axis=1), 1.0, atol=1e-2))
    print("KERNEL_OK")
</pallas_src>

<mosaic_0001>
module attributes {stable_mosaic.version = 11 : i64} {
  func.func @_ema_kernel(%arg0: memref<36x32xf32, #tpu.memory_space<vmem>>, %arg1: memref<36x32xf32, #tpu.memory_space<vmem>>, %arg2: memref<36x32xf32, #tpu.memory_space<vmem>>) attributes {dimension_semantics = [], scalar_prefetch = 0 : i64, scratch_operands = 0 : i64, tpu.core_type = #tpu.core_type<tc>} {
    %c0 = arith.constant 0 : index
    %c0_0 = arith.constant 0 : index
    %0 = vector.load %arg0[%c0, %c0_0] : memref<36x32xf32, #tpu.memory_space<vmem>>, vector<36x32xf32>
    %cst = arith.constant 9.990000e-01 : f32
    %1 = vector.broadcast %cst : f32 to vector<36x32xf32>
    %2 = arith.mulf %0, %1 : vector<36x32xf32>
    %c0_1 = arith.constant 0 : index
    %c0_2 = arith.constant 0 : index
    %3 = vector.load %arg1[%c0_1, %c0_2] : memref<36x32xf32, #tpu.memory_space<vmem>>, vector<36x32xf32>
    %cst_3 = arith.constant 1.000000e-03 : f32
    %4 = vector.broadcast %cst_3 : f32 to vector<36x32xf32>
    %5 = arith.mulf %3, %4 : vector<36x32xf32>
    %6 = arith.addf %2, %5 : vector<36x32xf32>
    %c0_4 = arith.constant 0 : index
    %c0_5 = arith.constant 0 : index
    %7 = vector.load %arg2[%c0_4, %c0_5] : memref<36x32xf32, #tpu.memory_space<vmem>>, vector<36x32xf32>
    tpu.vector_store %arg2[%c0_4, %c0_5], %6 {strides = array<i32>} : memref<36x32xf32, #tpu.memory_space<vmem>>, vector<36x32xf32>,
    return
  }
}

module attributes {stable_mosaic.version = 11 : i64} {
  func.func @_ema_kernel(%arg0: memref<1x32xf32, #tpu.memory_space<vmem>>, %arg1: memref<1x32xf32, #tpu.memory_space<vmem>>, %arg2: memref<1x32xf32, #tpu.memory_space<vmem>>) attributes {dimension_semantics = [], scalar_prefetch = 0 : i64, scratch_operands = 0 : i64, tpu.core_type = #tpu.core_type<tc>} {
    %c0 = arith.constant 0 : index
    %c0_0 = arith.constant 0 : index
    %0 = vector.load %arg0[%c0, %c0_0] : memref<1x32xf32, #tpu.memory_space<vmem>>, vector<1x32xf32>
    %cst = arith.constant 9.990000e-01 : f32
    %1 = vector.broadcast %cst : f32 to vector<1x32xf32>
    %2 = arith.mulf %0, %1 : vector<1x32xf32>
    %c0_1 = arith.constant 0 : index
    %c0_2 = arith.constant 0 : index
    %3 = vector.load %arg1[%c0_1, %c0_2] : memref<1x32xf32, #tpu.memory_space<vmem>>, vector<1x32xf32>
    %cst_3 = arith.constant 1.000000e-03 : f32
    %4 = vector.broadcast %cst_3 : f32 to vector<1x32xf32>
    %5 = arith.mulf %3, %4 : vector<1x32xf32>
    %6 = arith.addf %2, %5 : vector<1x32xf32>
    %c0_4 = arith.constant 0 : index
    %c0_5 = arith.constant 0 : index
    %7 = vector.load %arg2[%c0_4, %c0_5] : memref<1x32xf32, #tpu.memory_space<vmem>>, vector<1x32xf32>
    tpu.vector_store %arg2[%c0_4, %c0_5], %6 {strides = array<i32>} : memref<1x32xf32, #tpu.memory_space<vmem>>, vector<1x32xf32>,
    return
  }
}

module attributes {stable_mosaic.version = 11 : i64} {
  func.func @_ema_kernel(%arg0: memref<32x32xf32, #tpu.memory_space<vmem>>, %arg1: memref<32x32xf32, #tpu.memory_space<vmem>>, %arg2: memref<32x32xf32, #tpu.memory_space<vmem>>) attributes {dimension_semantics = [], scalar_prefetch = 0 : i64, scratch_operands = 0 : i64, tpu.core_type = #tpu.core_type<tc>} {
    %c0 = arith.constant 0 : index
    %c0_0 = arith.constant 0 : index
    %0 = vector.load %arg0[%c0, %c0_0] : memref<32x32xf32, #tpu.memory_space<vmem>>, vector<32x32xf32>
    %cst = arith.constant 9.990000e-01 : f32
    %1 = vector.broadcast %cst : f32 to vector<32x32xf32>
    %2 = arith.mulf %0, %1 : vector<32x32xf32>
    %c0_1 = arith.constant 0 : index
    %c0_2 = arith.constant 0 : index
    %3 = vector.load %arg1[%c0_1, %c0_2] : memref<32x32xf32, #tpu.memory_space<vmem>>, vector<32x32xf32>
    %cst_3 = arith.constant 1.000000e-03 : f32
    %4 = vector.broadcast %cst_3 : f32 to vector<32x32xf32>
    %5 = arith.mulf %3, %4 : vector<32x32xf32>
    %6 = arith.addf %2, %5 : vector<32x32xf32>
    %c0_4 = arith.constant 0 : index
    %c0_5 = arith.constant 0 : index
    %7 = vector.load %arg2[%c0_4, %c0_5] : memref<32x32xf32, #tpu.memory_space<vmem>>, vector<32x32xf32>
    tpu.vector_store %arg2[%c0_4, %c0_5], %6 {strides = array<i32>} : memref<32x32xf32, #tpu.memory_space<vmem>>, vector<32x32xf32>,
    return
  }
}

module attributes {stable_mosaic.version = 11 : i64} {
  func.func @_fused_branch_kernel(%arg0: i32, %arg1: i32, %arg2: memref<1x2x256x36xbf16, #tpu.memory_space<vmem>>, %arg3: memref<1x36x128xbf16, #tpu.memory_space<vmem>>, %arg4: memref<1x1x128xf32, #tpu.memory_space<vmem>>, %arg5: memref<1x128x128xbf16, #tpu.memory_space<vmem>>, %arg6: memref<1x1x128xf32, #tpu.memory_space<vmem>>, %arg7: memref<1x128x128xbf16, #tpu.memory_space<vmem>>, %arg8: memref<1x1x128xf32, #tpu.memory_space<vmem>>, %arg9: memref<1x128x128xbf16, #tpu.memory_space<vmem>>, %arg10: memref<1x1x128xf32, #tpu.memory_space<vmem>>, %arg11: memref<1x2x128xf32, #tpu.memory_space<vmem>>, %arg12: memref<1x2x128xf32, #tpu.memory_space<vmem>>) attributes {dimension_semantics = [#tpu.dimension_semantics<parallel>, #tpu.dimension_semantics<parallel>], iteration_bounds = array<i64: 2, 1>, scalar_prefetch = 0 : i64, scratch_operands = 0 : i64, tpu.core_type = #tpu.core_type<tc>, window_params = [{transform_indices = @transform_0, window_bounds = array<i64: 1, 2, 256, 36>}, {transform_indices = @transform_1, window_bounds = array<i64: 1, 36, 128>}, {transform_indices = @transform_2, window_bounds = array<i64: 1, 1, 128>}, {transform_indices = @transform_3, window_bounds = array<i64: 1, 128, 128>}, {transform_indices = @transform_4, window_bounds = array<i64: 1, 1, 128>}, {transform_indices = @transform_5, window_bounds = array<i64: 1, 128, 128>}, {transform_indices = @transform_6, window_bounds = array<i64: 1, 1, 128>}, {transform_indices = @transform_7, window_bounds = array<i64: 1, 128, 128>}, {transform_indices = @transform_8, window_bounds = array<i64: 1, 1, 128>}, {transform_indices = @transform_9, window_bounds = array<i64: 1, 2, 128>}, {transform_indices = @transform_10, window_bounds = array<i64: 1, 2, 128>}]} {
    %c0 = arith.constant 0 : index
    %c0_0 = arith.constant 0 : index
    %c0_1 = arith.constant 0 : index
    %c0_2 = arith.constant 0 : index
    %0 = vector.load %arg2[%c0, %c0_0, %c0_1, %c0_2] : memref<1x2x256x36xbf16, #tpu.memory_space<vmem>>, vector<1x2x256x36xbf16>
    %1 = vector.shape_cast %0 : vector<1x2x256x36xbf16> to vector<2x256x36xbf16>
    %2 = vector.shape_cast %1 : vector<2x256x36xbf16> to vector<512x36xbf16>
    %c0_3 = arith.constant 0 : index
    %c0_4 = arith.constant 0 : index
    %c0_5 = arith.constant 0 : index
    %3 = vector.load %arg3[%c0_3, %c0_4, %c0_5] : memref<1x36x128xbf16, #tpu.memory_space<vmem>>, vector<1x36x128xbf16>
    %4 = vector.shape_cast %3 : vector<1x36x128xbf16> to vector<36x128xbf16>
    %cst = arith.constant dense<0.000000e+00> : vector<512x128xf32>
    %5 = tpu.matmul %2, %4, %cst {dimension_numbers = #tpu.dot_dimension_numbers<[1], [0], [0], [1], [0, 0, 1, 1], [], []>} : vector<512x36xbf16>, vector<36x128xbf16>, vector<512x128xf32> -> vector<512x128xf32>
    %c0_6 = arith.constant 0 : index
    %c0_7 = arith.constant 0 : index
    %c0_8 = arith.constant 0 : index
    %6 = vector.load %arg4[%c0_6, %c0_7, %c0_8] : memref<1x1x128xf32, #tpu.memory_space<vmem>>, vector<1x1x128xf32>
    %7 = vector.shape_cast %6 : vector<1x1x128xf32> to vector<1x128xf32>
    %8 = vector.broadcast %7 : vector<1x128xf32> to vector<512x128xf32>
    %9 = arith.addf %5, %8 : vector<512x128xf32>
    %cst_9 = arith.constant 0.000000e+00 : f32
    %10 = vector.broadcast %cst_9 : f32 to vector<512x128xf32>
    %11 = arith.maximumf %9, %10 : vector<512x128xf32>
    %12 = vector.shape_cast %11 : vector<512x128xf32> to vector<2x256x128xf32>
    %cst_10 = arith.constant dense<0.000000e+00> : vector<2x128xf32>
    %13 = vector.multi_reduction <add>, %12, %cst_10 [1] : vector<2x256x128xf32> to vector<2x128xf32>
    %14 = arith.truncf %13 : vector<2x128xf32> to vector<2x128xbf16>
    %c0_11 = arith.constant 0 : index
    %c0_12 = arith.constant 0 : index
    %c0_13 = arith.constant 0 : index
    %15 = vector.load %arg5[%c0_11, %c0_12, %c0_13] : memref<1x128x128xbf16, #tpu.memory_space<vmem>>, vector<1x128x128xbf16>
    %16 = vector.shape_cast %15 : vector<1x128x128xbf16> to vector<128x128xbf16>
    %cst_14 = arith.constant dense<0.000000e+00> : vector<2x128xf32>
    %17 = tpu.matmul %14, %16, %cst_14 {dimension_numbers = #tpu.dot_dimension_numbers<[1], [0], [0], [1], [0, 0, 1, 1], [], []>} : vector<2x128xbf16>, vector<128x128xbf16>, vector<2x128xf32> -> vector<2x128xf32>
    %c0_15 = arith.constant 0 : index
    %c0_16 = arith.constant 0 : index
    %c0_17 = arith.constant 0 : index
    %18 = vector.load %arg6[%c0_15, %c0_16, %c0_17] : memref<1x1x128xf32, #tpu.memory_space<vmem>>, vector<1x1x128xf32>
    %19 = vector.shape_cast %18 : vector<1x1x128xf32> to vector<1x128xf32>
    %20 = vector.broadcast %19 : vector<1x128xf32> to vector<2x128xf32>
    %21 = arith.addf %17, %20 : vector<2x128xf32>
    %c0_18 = arith.constant 0 : index
    %c0_19 = arith.constant 0 : index
    %c0_20 = arith.constant 0 : index
    %22 = vector.load %arg11[%c0_18, %c0_19, %c0_20] : memref<1x2x128xf32, #tpu.memory_space<vmem>>, vector<1x2x128xf32>
    %23 = vector.shape_cast %22 : vector<1x2x128xf32> to vector<2x128xf32>
    %24 = vector.shape_cast %21 : vector<2x128xf32> to vector<1x2x128xf32>
    tpu.vector_store %arg11[%c0_18, %c0_19, %c0_20], %24 {strides = array<i32>} : memref<1x2x128xf32, #tpu.memory_space<vmem>>, vector<1x2x128xf32>,
    %25 = arith.truncf %21 : vector<2x128xf32> to vector<2x128xbf16>
    %c0_21 = arith.constant 0 : index
    %c0_22 = arith.constant 0 : index
    %c0_23 = arith.constant 0 : index
    %26 = vector.load %arg7[%c0_21, %c0_22, %c0_23] : memref<1x128x128xbf16, #tpu.memory_space<vmem>>, vector<1x128x128xbf16>
    %27 = vector.shape_cast %26 : vector<1x128x128xbf16> to vector<128x128xbf16>
    %cst_24 = arith.constant dense<0.000000e+00> : vector<2x128xf32>
    %28 = tpu.matmul %25, %27, %cst_24 {dimension_numbers = #tpu.dot_dimension_numbers<[1], [0], [0], [1], [0, 0, 1, 1], [], []>} : vector<2x128xbf16>, vector<128x128xbf16>, vector<2x128xf32> -> vector<2x128xf32>
    %c0_25 = arith.constant 0 : index
    %c0_26 = arith.constant 0 : index
    %c0_27 = arith.constant 0 : index
    %29 = vector.load %arg8[%c0_25, %c0_26, %c0_27] : memref<1x1x128xf32, #tpu.memory_space<vmem>>, vector<1x1x128xf32>
    %30 = vector.shape_cast %29 : vector<1x1x128xf32> to vector<1x128xf32>
    %31 = vector.broadcast %30 : vector<1x128xf32> to vector<2x128xf32>
    %32 = arith.addf %28, %31 : vector<2x128xf32>
    %cst_28 = arith.constant 0.000000e+00 : f32
    %33 = vector.broadcast %cst_28 : f32 to vector<2x128xf32>
    %34 = arith.maximumf %32, %33 : vector<2x128xf32>
    %35 = arith.truncf %34 : vector<2x128xf32> to vector<2x128xbf16>
    %c0_29 = arith.constant 0 : index
    %c0_30 = arith.constant 0 : index
    %c0_31 = arith.constant 0 : index
    %36 = vector.load %arg9[%c0_29, %c0_30, %c0_31] : memref<1x128x128xbf16, #tpu.memory_space<vmem>>, vector<1x128x128xbf16>
    %37 = vector.shape_cast %36 : vector<1x128x128xbf16> to vector<128x128xbf16>
    %cst_32 = arith.constant dense<0.000000e+00> : vector<2x128xf32>
    %38 = tpu.matmul %35, %37, %cst_32 {dimension_numbers = #tpu.dot_dimension_numbers<[1], [0], [0], [1], [0, 0, 1, 1], [], []>} : vector<2x128xbf16>, vector<128x128xbf16>, vector<2x128xf32> -> vector<2x128xf32>
    %c0_33 = arith.constant 0 : index
    %c0_34 = arith.constant 0 : index
    %c0_35 = arith.constant 0 : index
    %39 = vector.load %arg10[%c0_33, %c0_34, %c0_35] : memref<1x1x128xf32, #tpu.memory_space<vmem>>, vector<1x1x128xf32>
    %40 = vector.shape_cast %39 : vector<1x1x128xf32> to vector<1x128xf32>
    %41 = vector.broadcast %40 : vector<1x128xf32> to vector<2x128xf32>
    %42 = arith.addf %38, %41 : vector<2x128xf32>
    %43 = arith.mulf %42, %42 : vector<2x128xf32>
    %cst_36 = arith.constant dense<0.000000e+00> : vector<2xf32>
    %44 = vector.multi_reduction <add>, %43, %cst_36 [1] : vector<2x128xf32> to vector<2xf32>
    %45 = vector.shape_cast %44 : vector<2xf32> to vector<2x1xf32>
    %cst_37 = arith.constant 1.000000e-24 : f32
    %46 = vector.broadcast %cst_37 : f32 to vector<2x1xf32>
    %47 = arith.maximumf %45, %46 : vector<2x1xf32>
    %48 = math.rsqrt %47 : vector<2x1xf32>
    %49 = vector.broadcast %48 : vector<2x1xf32> to vector<2x128xf32>
    %50 = arith.mulf %42, %49 : vector<2x128xf32>
    %c0_38 = arith.constant 0 : index
    %c0_39 = arith.constant 0 : index
    %c0_40 = arith.constant 0 : index
    %51 = vector.load %arg12[%c0_38, %c0_39, %c0_40] : memref<1x2x128xf32, #tpu.memory_space<vmem>>, vector<1x2x128xf32>
    %52 = vector.shape_cast %51 : vector<1x2x128xf32> to vector<2x128xf32>
    %53 = vector.shape_cast %50 : vector<2x128xf32> to vector<1x2x128xf32>
    tpu.vector_store %arg12[%c0_38, %c0_39, %c0_40], %53 {strides = array<i32>} : memref<1x2x128xf32, #tpu.memory_space<vmem>>, vector<1x2x128xf32>,
    return
  }
  func.func @transform_0(%arg0: i32, %arg1: i32) -> (i32, i32, i32, i32) {
    %c0_i32 = arith.constant 0 : i32
    %c0_i32_0 = arith.constant 0 : i32
    %c0_i32_1 = arith.constant 0 : i32
    return %arg0, %arg1, %c0_i32, %c0_i32_0 : i32, i32, i32, i32
  }
  func.func @transform_1(%arg0: i32, %arg1: i32) -> (i32, i32, i32) {
    %c0_i32 = arith.constant 0 : i32
    %c0_i32_0 = arith.constant 0 : i32
    %c0_i32_1 = arith.constant 0 : i32
    return %arg0, %c0_i32, %c0_i32_0 : i32, i32, i32
  }
  func.func @transform_2(%arg0: i32, %arg1: i32) -> (i32, i32, i32) {
    %c0_i32 = arith.constant 0 : i32
    %c0_i32_0 = arith.constant 0 : i32
    %c0_i32_1 = arith.constant 0 : i32
    return %arg0, %c0_i32, %c0_i32_0 : i32, i32, i32
  }
  func.func @transform_3(%arg0: i32, %arg1: i32) -> (i32, i32, i32) {
    %c0_i32 = arith.constant 0 : i32
    %c0_i32_0 = arith.constant 0 : i32
    %c0_i32_1 = arith.constant 0 : i32
    return %arg0, %c0_i32, %c0_i32_0 : i32, i32, i32
  }
  func.func @transform_4(%arg0: i32, %arg1: i32) -> (i32, i32, i32) {
    %c0_i32 = arith.constant 0 : i32
    %c0_i32_0 = arith.constant 0 : i32
    %c0_i32_1 = arith.constant 0 : i32
    return %arg0, %c0_i32, %c0_i32_0 : i32, i32, i32
  }
  func.func @transform_5(%arg0: i32, %arg1: i32) -> (i32, i32, i32) {
    %c0_i32 = arith.constant 0 : i32
    %c0_i32_0 = arith.constant 0 : i32
    %c0_i32_1 = arith.constant 0 : i32
    return %arg0, %c0_i32, %c0_i32_0 : i32, i32, i32
  }
  func.func @transform_6(%arg0: i32, %arg1: i32) -> (i32, i32, i32) {
    %c0_i32 = arith.constant 0 : i32
    %c0_i32_0 = arith.constant 0 : i32
    %c0_i32_1 = arith.constant 0 : i32
    return %arg0, %c0_i32, %c0_i32_0 : i32, i32, i32
  }
  func.func @transform_7(%arg0: i32, %arg1: i32) -> (i32, i32, i32) {
    %c0_i32 = arith.constant 0 : i32
    %c0_i32_0 = arith.constant 0 : i32
    %c0_i32_1 = arith.constant 0 : i32
    return %arg0, %c0_i32, %c0_i32_0 : i32, i32, i32
  }
  func.func @transform_8(%arg0: i32, %arg1: i32) -> (i32, i32, i32) {
    %c0_i32 = arith.constant 0 : i32
    %c0_i32_0 = arith.constant 0 : i32
    %c0_i32_1 = arith.constant 0 : i32
    return %arg0, %c0_i32, %c0_i32_0 : i32, i32, i32
  }
  func.func @transform_9(%arg0: i32, %arg1: i32) -> (i32, i32, i32) {
    %c0_i32 = arith.constant 0 : i32
    %c0_i32_0 = arith.constant 0 : i32
    return %arg0, %arg1, %c0_i32 : i32, i32, i32
  }
  func.func @transform_10(%arg0: i32, %arg1: i32) -> (i32, i32, i32) {
    %c0_i32 = arith.constant 0 : i32
    %c0_i32_0 = arith.constant 0 : i32
    return %arg0, %arg1, %c0_i32 : i32, i32, i32
  }
}

</mosaic_0001>

<bundles_post_ra>
// kernel: sumoco_forward_train.9
= control target key start
LH: loop header
LB: loop body
LE: loop exit
PB: predicated region body
PF: predicated region fallthrough
CT: control target
= control target key end

     0   :  { %vm16_vm0 = vcmask 253952   ;;  %s46_s0 = inlined_call_operand.vmem [shape: f32[1,32], index: 0, kind: input, shape index: {}, may-alias: {0,2}]   ;;  %s47_s1 = inlined_call_operand.vmem [shape: f32[1,32], index: 1, kind: input, shape index: {}]   ;;  %s48_s2 = inlined_call_operand.vmem [shape: f32[1,32], index: 2, kind: output, shape index: {}, may-alias: {0,2}]  }
   0x1   :  { %v11_v0 = vld [vmem:[%s46_s0] sm:$0x1] }
   0x2   :  { %v13_v1 = vld [vmem:[%s47_s1] sm:$0x1]  ;;  %v12_v2 = vmul.f32 0.999, %v11_v0 }
   0x3   :  { %v14_v3 = vmul.f32 0.001, %v13_v1 }
   0x5   :  { %v15_v4 = vadd.f32 %v14_v3, %v12_v2 }
   0x7   :  { %17 = vst.msk [vmem:[%s48_s2] sm:$0x1] %vm16_vm0, %v15_v4 }

// kernel: sumoco_forward_train.10
= control target key start
LH: loop header
LB: loop body
LE: loop exit
PB: predicated region body
PF: predicated region fallthrough
CT: control target
= control target key end

     0   :  { %vm36_vm0 = vcmask 261120   ;;  %vm41_vm1 = vcmask 257024   ;;  %s111_s0 = inlined_call_operand.vmem [shape: f32[36,32], index: 0, kind: input, shape index: {}, may-alias: {0,2}]   ;;  %s112_s1 = inlined_call_operand.vmem [shape: f32[36,32], index: 1, kind: input, shape index: {}]   ;;  %s113_s2 = inlined_call_operand.vmem [shape: f32[36,32], index: 2, kind: output, shape index: {}, may-alias: {0,2}]  }
   0x1   :  { %v11_v0 = vld [vmem:[%s111_s0] sm:$0xff]  ;;  %v12_v2 = vld [vmem:[%s111_s0 + $0x8] sm:$0xff]  ;;  %v13_v7 = vld [vmem:[%s111_s0 + $0x10] sm:$0xff] }
   0x2   :  { %v21_v1 = vld [vmem:[%s112_s1] sm:$0xff]  ;;  %v16_v3 = vmul.f32 0.999, %v11_v0  ;;  %v17_v5 = vmul.f32 0.999, %v12_v2  ;;  %v22_v6 = vld [vmem:[%s112_s1 + $0x8] sm:$0xff] }
   0x3   :  { %v26_v4 = vmul.f32 0.001, %v21_v1  ;;  %v23_v8 = vld [vmem:[%s112_s1 + $0x10] sm:$0xff]  ;;  %v27_v10 = vmul.f32 0.001, %v22_v6  ;;  %v14_v13 = vld [vmem:[%s111_s0 + $0x18] sm:$0xff] }
   0x4   :  { %v18_v11 = vmul.f32 0.999, %v13_v7  ;;  %v28_v12 = vmul.f32 0.001, %v23_v8  ;;  %v24_v14 = vld [vmem:[%s112_s1 + $0x18] sm:$0xff] }
   0x5   :  { %v31_v9 = vadd.f32 %v26_v4, %v16_v3  ;;  %v15_v15 = vld [vmem:[%s111_s0 + $0x20] sm:$0xf]  ;;  %v32_v16 = vadd.f32 %v27_v10, %v17_v5  ;;  %v19_v18 = vmul.f32 0.999, %v14_v13  ;;  %v29_v19 = vmul.f32 0.001, %v24_v14 }
   0x6   :  { %v33_v17 = vadd.f32 %v28_v12, %v18_v11  ;;  %v20_v20 = vmul.f32 0.999, %v15_v15  ;;  %v25_v21 = vld [vmem:[%s112_s1 + $0x20] sm:$0xf] }
   0x7   :  { %37 = vst.msk [vmem:[%s113_s2] sm:$0xff] %vm36_vm0, %v31_v9  ;;  %v34_v22 = vadd.f32 %v29_v19, %v19_v18  ;;  %v30_v23 = vmul.f32 0.001, %v25_v21 }
   0x8   :  { %38 = vst.msk [vmem:[%s113_s2 + $0x8] sm:$0xff] %vm36_vm0, %v32_v16 }
   0x9   :  { %39 = vst.msk [vmem:[%s113_s2 + $0x10] sm:$0xff] %vm36_vm0, %v33_v17  ;;  %v35_v24 = vadd.f32 %v30_v23, %v20_v20 }
   0xa   :  { %40 = vst.msk [vmem:[%s113_s2 + $0x18] sm:$0xff] %vm36_vm0, %v34_v22 }
   0xb   :  { %42 = vst.msk [vmem:[%s113_s2 + $0x20] sm:$0xf] %vm41_vm1, %v35_v24 }

// kernel: sumoco_forward_train.12
= control target key start
LH: loop header
LB: loop body
LE: loop exit
PB: predicated region body
PF: predicated region fallthrough
CT: control target
= control target key end

     0   :  { %vm31_vm0 = vcmask 261120   ;;  %s95_s0 = inlined_call_operand.vmem [shape: f32[32,32], index: 0, kind: input, shape index: {}, may-alias: {0,2}]   ;;  %s96_s1 = inlined_call_operand.vmem [shape: f32[32,32], index: 1, kind: input, shape index: {}]   ;;  %s97_s2 = inlined_call_operand.vmem [shape: f32[32,32], index: 2, kind: output, shape index: {}, may-alias: {0,2}]  }
   0x1   :  { %v11_v0 = vld [vmem:[%s95_s0] sm:$0xff]  ;;  %v12_v2 = vld [vmem:[%s95_s0 + $0x8] sm:$0xff]  ;;  %v13_v7 = vld [vmem:[%s95_s0 + $0x10] sm:$0xff] }
   0x2   :  { %v19_v1 = vld [vmem:[%s96_s1] sm:$0xff]  ;;  %v15_v3 = vmul.f32 0.999, %v11_v0  ;;  %v16_v5 = vmul.f32 0.999, %v12_v2  ;;  %v20_v6 = vld [vmem:[%s96_s1 + $0x8] sm:$0xff] }
   0x3   :  { %v23_v4 = vmul.f32 0.001, %v19_v1  ;;  %v21_v8 = vld [vmem:[%s96_s1 + $0x10] sm:$0xff]  ;;  %v24_v10 = vmul.f32 0.001, %v20_v6  ;;  %v14_v13 = vld [vmem:[%s95_s0 + $0x18] sm:$0xff] }
   0x4   :  { %v17_v11 = vmul.f32 0.999, %v13_v7  ;;  %v25_v12 = vmul.f32 0.001, %v21_v8  ;;  %v22_v14 = vld [vmem:[%s96_s1 + $0x18] sm:$0xff] }
   0x5   :  { %v27_v9 = vadd.f32 %v23_v4, %v15_v3  ;;  %v28_v15 = vadd.f32 %v24_v10, %v16_v5  ;;  %v18_v17 = vmul.f32 0.999, %v14_v13  ;;  %v26_v18 = vmul.f32 0.001, %v22_v14 }
   0x6   :  { %v29_v16 = vadd.f32 %v25_v12, %v17_v11 }
   0x7   :  { %32 = vst.msk [vmem:[%s97_s2] sm:$0xff] %vm31_vm0, %v27_v9  ;;  %v30_v19 = vadd.f32 %v26_v18, %v18_v17 }
   0x8   :  { %33 = vst.msk [vmem:[%s97_s2 + $0x8] sm:$0xff] %vm31_vm0, %v28_v15 }
   0x9   :  { %34 = vst.msk [vmem:[%s97_s2 + $0x10] sm:$0xff] %vm31_vm0, %v29_v16 }
   0xa   :  { %35 = vst.msk [vmem:[%s97_s2 + $0x18] sm:$0xff] %vm31_vm0, %v30_v19 }

// kernel: sumoco_forward_train.17
= control target key start
LH: loop header
LB: loop body
LE: loop exit
PB: predicated region body
PF: predicated region fallthrough
CT: control target
= control target key end

     0   :  { %s2151_s13 = smov 0   ;;  %s2153_s14 = smov 0   ;;  %s2487_s0 = inlined_call_operand.vmem [shape: bf16[2,2,256,36], index: 0, kind: input, shape index: {}]   ;;  %s2488_s1 = inlined_call_operand.vmem [shape: bf16[2,36,128], index: 1, kind: input, shape index: {}]   ;;  %s2489_s2 = inlined_call_operand.vmem [shape: f32[2,1,128], index: 2, kind: input, shape index: {}]   ;;  %s2490_s3 = inlined_call_operand.vmem [shape: bf16[2,128,128], index: 3, kind: input, shape index: {}]   ;;  %s2491_s4 = inlined_call_operand.vmem [shape: f32[2,1,128], index: 4, kind: input, shape index: {}]   ;;  %s2492_s5 = inlined_call_operand.vmem [shape: bf16[2,128,128], index: 5, kind: input, shape index: {}]   ;;  %s2493_s6 = inlined_call_operand.vmem [shape: f32[2,1,128], index: 6, kind: input, shape index: {}]   ;;  %s2494_s7 = inlined_call_operand.vmem [shape: bf16[2,128,128], index: 7, kind: input, shape index: {}]   ;;  %s2495_s8 = inlined_call_operand.vmem [shape: f32[2,1,128], index: 8, kind: input, shape index: {}]   ;;  %s2496_s9 = inlined_call_operand.vmem [shape: f32[2,2,128], index: 9, kind: output, shape index: {0}]   ;;  %s2497_s10 = inlined_call_operand.vmem [shape: f32[2,2,128], index: 10, kind: output, shape index: {1}]  }
   0x1   :  { %s2155_s15 = smov 0  }
   0x2 LB: > { %s33_s16 = sadd.s32 1, %s2090_s14  ;;  %p1692_p0 = scmp.ge.s32.totalorder %s2094_s15, 1  ;;  %s2094_s15 = sphi %s2155_s15, %s21_s15   ;;  %s2090_s14 = sphi %s2153_s14, %s2499_s14   ;;  %s2086_s13 = sphi %s2151_s13, %s2498_s13  }
   0x3   : > { %p35_p1 = scmp.ge.s32.totalorder %s33_s16, 2  ;;  %p411_p2 = scmp.lt.s32.totalorder %s2094_s15, 3 }
   0x5   : > { %s2501_s16 = smov (%p35_p1, %s33_s16), 0  ;;  %p412_p3 = pnand %p1692_p0, %p411_p2 }
   0x6   : > { %p496_p4 = scmp.lt.s32.totalorder (!%p412_p3), %s2086_s13, 1 }
   0x7   : > { %415 = sbr.rel (%p412_p3) target bundleno = 916 (0x394), region = 56 }
   0xc   : > { %s2503_s13 = smov (!%p496_p4, %s2086_s13), 1  ;;  %vm898_vm0 = vcmask 1041408   ;;  %vm801_vm1 = vcmask 293888   ;;  %vm1235_vm2 = vcmask 1041409  }
   0xd   : > { %s2041_s17 = smul.u32 20, %s2503_s13  ;;  %s513_s20 = scalar_lea.vmem %s2489_s2, %s2503_s13 }
   0xe   : > { %s1970_s24 = sshll.u32 %s2503_s13, 8  ;;  %v2247_v34 = vld [vmem:[%s513_s20] ss:$0 sm:$0xff]  ;;  %s2283_s30 = sshll.u32 %s2503_s13, 6 }
   0xf   : > { %s510_s23 = scalar_lea.vmem %s2488_s1, %s2041_s17  ;;  %s2184_s27 = scalar_lea.vmem %s2487_s0, %s1970_s24 }
  0x10   : > { %v621_v0 = vld [vmem:[%s510_s23 + $0x10] sm:$0x3]  ;;  %v2007_v4 = vld [vmem:[%s510_s23 + $0x8] sm:$0xff]  ;;  %v2006_v5 = vld [vmem:[%s510_s23] sm:$0xff]  ;;  %s2296_s17 = scalar_lea.vmem %s2490_s3, %s2283_s30  ;;  %s521_s20 = scalar_lea.vmem %s2491_s4, %s2503_s13 }
  0x11   : > { %v795_v1 = vunpack.c.l.b16 %v621_v0  ;;  %v1974_v6 = vld [vmem:[%s2184_s27] sm:$0xff]  ;;  %v1984_v7 = vld [vmem:[%s2184_s27 + $0x50] sm:$0xff]  ;;  %v1993_v8 = vld [vmem:[%s2184_s27 + $0x98] sm:$0xff]  ;;  %s2434_s23 = scalar_lea.vmem %s2492_s5, %s2283_s30  ;;  %s529_s26 = scalar_lea.vmem %s2493_s6, %s2503_s13 }
  0x12   : > { %v1975_v9 = vld [vmem:[%s2184_s27 + $0x8] sm:$0xff]  ;;  %v1985_v10 = vld [vmem:[%s2184_s27 + $0x58] sm:$0xff]  ;;  %v1994_v11 = vld [vmem:[%s2184_s27 + $0xa0] sm:$0xff]  ;;  %s534_s29 = scalar_lea.vmem %s2494_s7, %s2283_s30  ;;  %s1702_s11 = sshll.u32 %s2503_s13, 1 }
  0x13   : > { %v798_v2 = vpack.c.b16 %v795_v1, %v795_v1  ;;  %v1976_v12 = vld [vmem:[%s2184_s27 + $0x10] sm:$0xff]  ;;  %v1986_v13 = vld [vmem:[%s2184_s27 + $0x60] sm:$0xff]  ;;  %v1995_v14 = vld [vmem:[%s2184_s27 + $0xa8] sm:$0xff]  ;;  %s544_s19 = scalar_lea.vmem %s2496_s9, %s1702_s11  ;;  %s551_s25 = scalar_lea.vmem %s2497_s10, %s1702_s11 }
  0x14   : > { %v1977_v15 = vld [vmem:[%s2184_s27 + $0x18] sm:$0xff]  ;;  %v1987_v16 = vld [vmem:[%s2184_s27 + $0x68] sm:$0xff]  ;;  %v1996_v17 = vld [vmem:[%s2184_s27 + $0xb0] sm:$0xff] }
  0x15   : > { %v900_v3 = vsel %vm898_vm0, %v798_v2, 0  ;;  %v1978_v18 = vld [vmem:[%s2184_s27 + $0x20] sm:$0xff]  ;;  %v1988_v19 = vld [vmem:[%s2184_s27 + $0x70] sm:$0xff]  ;;  %v1997_v20 = vld [vmem:[%s2184_s27 + $0xb8] sm:$0xff] }
  0x16   : > { %907 = vmatpush.bf16.msra.mxu0 %v900_v3  ;;  %2032 = vmatpush.bf16.msra.mxu1 %v900_v3  ;;  %v2001_v21 = vld [vmem:[%s2184_s27 + $0xd8] sm:$0xff]  ;;  %v1979_v22 = vld [vmem:[%s2184_s27 + $0x28] sm:$0xff]  ;;  %v1998_v24 = vld [vmem:[%s2184_s27 + $0xc0] sm:$0xff] }
  0x17   : > { %2033 = vmatpush.bf16.msra.mxu2 %v900_v3  ;;  %2034 = vmatpush.bf16.msra.mxu3 %v900_v3  ;;  %v1989_v23 = vld [vmem:[%s2184_s27 + $0x78] sm:$0xff]  ;;  %v2002_v25 = vld [vmem:[%s2184_s27 + $0xe0] sm:$0xff]  ;;  %v1980_v26 = vld [vmem:[%s2184_s27 + $0x30] sm:$0xff] }
  0x18   : > { %v1990_v27 = vld [vmem:[%s2184_s27 + $0x80] sm:$0xff]  ;;  %v1999_v28 = vld [vmem:[%s2184_s27 + $0xc8] sm:$0xff]  ;;  %v1981_v30 = vld [vmem:[%s2184_s27 + $0x38] sm:$0xff] }
  0x19   : > { %v2003_v29 = vld [vmem:[%s2184_s27 + $0xe8] sm:$0xff]  ;;  %v2000_v32 = vld [vmem:[%s2184_s27 + $0xd0] sm:$0xff]  ;;  %v1982_v35 = vld [vmem:[%s2184_s27 + $0x40] sm:$0xff] }
  0x1a   : > { %908 = vmatpush.bf16.msra.mxu0 %v2007_v4  ;;  %2035 = vmatpush.bf16.msra.mxu1 %v2007_v4  ;;  %v1991_v31 = vld [vmem:[%s2184_s27 + $0x88] sm:$0xff]  ;;  %v2004_v33 = vld [vmem:[%s2184_s27 + $0xf0] sm:$0xff]  ;;  %v2005_v41 = vld [vmem:[%s2184_s27 + $0xf8] sm:$0xff] }
  0x1b   : > { %2036 = vmatpush.bf16.msra.mxu2 %v2007_v4  ;;  %2037 = vmatpush.bf16.msra.mxu3 %v2007_v4  ;;  %v1992_v36 = vld [vmem:[%s2184_s27 + $0x90] sm:$0xff]  ;;  %v1983_v51 = vld [vmem:[%s2184_s27 + $0x48] sm:$0xff] }
  0x1e   : > { %909 = vmatpush.bf16.msra.mxu0 %v2006_v5  ;;  %2038 = vmatpush.bf16.msra.mxu1 %v2006_v5 }
  0x1f   : > { %2039 = vmatpush.bf16.msra.mxu2 %v2006_v5  ;;  %2040 = vmatpush.bf16.msra.mxu3 %v2006_v5 }
  0x21   : > { %1840 = vmatmul.msk.bf16.vlgmr.msra.gmra.mxu0 %vm801_vm1, %v1974_v6  ;;  %1850 = vmatmul.msk.bf16.vlgmr.msra.gmra.mxu1 %vm801_vm1, %v1984_v7 }
  0x22   : > { %1859 = vmatmul.msk.bf16.vlgmr.msra.gmra.mxu2 %vm801_vm1, %v1993_v8  ;;  %1867 = vmatmul.msk.bf16.vlgmr.msra.gmra.mxu3 %vm801_vm1, %v2001_v21 }
  0x31   : > { %1841 = vmatmul.msk.bf16.gmra.mxu0 %vm801_vm1, %v1975_v9  ;;  %1851 = vmatmul.msk.bf16.gmra.mxu1 %vm801_vm1, %v1985_v10 }
  0x32   : > { %1860 = vmatmul.msk.bf16.gmra.mxu2 %vm801_vm1, %v1994_v11  ;;  %1868 = vmatmul.msk.bf16.gmra.mxu3 %vm801_vm1, %v2002_v25 }
  0x41   : > { %1842 = vmatmul.msk.bf16.gmra.mxu0 %vm801_vm1, %v1976_v12  ;;  %1852 = vmatmul.msk.bf16.gmra.mxu1 %vm801_vm1, %v1986_v13  ;;  %v2015_v12 = vld [vmem:[%s2296_s17 + $0x38] sm:$0xff] }
  0x42   : > { %1861 = vmatmul.msk.bf16.gmra.mxu2 %vm801_vm1, %v1995_v14  ;;  %1869 = vmatmul.msk.bf16.gmra.mxu3 %vm801_vm1, %v2003_v29 }
  0x43   : > { %1287 = vmatpush.bf16.msrb.mxu1 %v2015_v12 }
  0x51   : > { %1843 = vmatmul.msk.bf16.gmra.mxu0 %vm801_vm1, %v1977_v15  ;;  %1853 = vmatmul.msk.bf16.gmra.mxu1 %vm801_vm1, %v1987_v16 }
  0x52   : > { %1862 = vmatmul.msk.bf16.gmra.mxu2 %vm801_vm1, %v1996_v17  ;;  %1870 = vmatmul.msk.bf16.gmra.mxu3 %vm801_vm1, %v2004_v33  ;;  %v2014_v33 = vld [vmem:[%s2296_s17 + $0x30] sm:$0xff] }
  0x53   : > { %1288 = vmatpush.bf16.msrb.mxu1 %v2014_v33 }
  0x61   : > { %1844 = vmatmul.msk.bf16.gmra.mxu0 %vm801_vm1, %v1978_v18  ;;  %1854 = vmatmul.msk.bf16.gmra.mxu1 %vm801_vm1, %v1988_v19 }
  0x62   : > { %1863 = vmatmul.msk.bf16.gmra.mxu2 %vm801_vm1, %v1997_v20  ;;  %1871 = vmatmul.msk.bf16.gmra.mxu3 %vm801_vm1, %v2005_v41 }
  0x71   : > { %1845 = vmatmul.msk.bf16.gmra.mxu0 %vm801_vm1, %v1979_v22  ;;  %1855 = vmatmul.msk.bf16.gmra.mxu1 %vm801_vm1, %v1989_v23 }
  0x72   : > { %1864 = vmatmul.msk.bf16.gmra.mxu2 %vm801_vm1, %v1998_v24 }
  0x81   : > { %1846 = vmatmul.msk.bf16.gmra.mxu0 %vm801_vm1, %v1980_v26  ;;  %1856 = vmatmul.msk.bf16.gmra.mxu1 %vm801_vm1, %v1990_v27 }
  0x82   : > { %1865 = vmatmul.msk.bf16.gmra.mxu2 %vm801_vm1, %v1999_v28 }
  0x91   : > { %1847 = vmatmul.msk.bf16.gmra.mxu0 %vm801_vm1, %v1981_v30  ;;  %1857 = vmatmul.msk.bf16.gmra.mxu1 %vm801_vm1, %v1991_v31 }
  0x92   : > { %1866 = vmatmul.msk.bf16.gmra.mxu2 %vm801_vm1, %v2000_v32 }
  0x9e   : > { %v911_v37 = vpop.f32.mrf.mxu0  ;;  %v961_v38 = vpop.f32.mrf.mxu1 }
  0x9f   : > { %v912_v39 = vadd.f32 %v2247_v34, %v911_v37  ;;  %v2253_v40 = vadd.f32 %v2247_v34, %v961_v38 }
  0xa1   : > { %1848 = vmatmul.msk.bf16.gmra.mxu0 %vm801_vm1, %v1982_v35  ;;  %1858 = vmatmul.msk.bf16.gmra.mxu1 %vm801_vm1, %v1992_v36  ;;  %v1071_v44 = vmax.f32 %v912_v39, 0.0 }
  0xa5   : > { %v1006_v47 = vpop.f32.mrf.mxu2 }
  0xa6   : > { %v913_v42 = vpop.f32.mrf.mxu0  ;;  %v963_v43 = vpop.f32.mrf.mxu1  ;;  %v2264_v50 = vadd.f32 %v2247_v34, %v1006_v47 }
  0xa7   : > { %v914_v45 = vadd.f32 %v2247_v34, %v913_v42  ;;  %v2260_v46 = vadd.f32 %v2247_v34, %v963_v43 }
  0xa9   : > { %v1072_v48 = vmax.f32 %v914_v45, 0.0 }
  0xab   : > { %v1135_v49 = vadd.f32 %v1072_v48, %v1071_v44 }
  0xad   : > { %v1008_v56 = vpop.f32.mrf.mxu2 }
  0xae   : > { %v916_v52 = vpop.f32.mrf.mxu0  ;;  %v966_v53 = vpop.f32.mrf.mxu1  ;;  %v2272_v57 = vadd.f32 %v2247_v34, %v1008_v56 }
  0xaf   : > { %v917_v54 = vadd.f32 %v2247_v34, %v916_v52  ;;  %v2269_v55 = vadd.f32 %v2247_v34, %v966_v53  ;;  %v2013_v52 = vld [vmem:[%s2296_s17 + $0x28] sm:$0xff] }
  0xb0   : > { %1289 = vmatpush.bf16.msrb.mxu1 %v2013_v52 }
  0xb1   : > { %v1073_v58 = vmax.f32 %v917_v54, 0.0  ;;  %1849 = vmatmul.msk.bf16.gmra.mxu0 %vm801_vm1, %v1983_v51 }
  0xb3   : > { %v1136_v59 = vadd.f32 %v1135_v49, %v1073_v58 }
  0xb5   : > { %v1011_v0 = vpop.f32.mrf.mxu2 }
  0xb6   : > { %v918_v60 = vpop.f32.mrf.mxu0  ;;  %v968_v61 = vpop.f32.mrf.mxu1  ;;  %v2280_v3 = vadd.f32 %v2247_v34, %v1011_v0 }
  0xb7   : > { %v919_v62 = vadd.f32 %v2247_v34, %v918_v60  ;;  %v2277_v63 = vadd.f32 %v2247_v34, %v968_v61 }
  0xb9   : > { %v1074_v1 = vmax.f32 %v919_v62, 0.0 }
  0xbb   : > { %v1137_v2 = vadd.f32 %v1136_v59, %v1074_v1 }
  0xbd   : > { %v1013_v8 = vpop.f32.mrf.mxu2 }
  0xbe   : > { %v921_v4 = vpop.f32.mrf.mxu0  ;;  %v971_v5 = vpop.f32.mrf.mxu1  ;;  %v2290_v9 = vadd.f32 %v2247_v34, %v1013_v8 }
  0xbf   : > { %v922_v6 = vadd.f32 %v2247_v34, %v921_v4  ;;  %v2287_v7 = vadd.f32 %v2247_v34, %v971_v5  ;;  %v2344_v8 = vpop.f32.mrf.mxu3 }
  0xc1   : > { %v1075_v10 = vmax.f32 %v922_v6, 0.0 }
  0xc3   : > { %v1138_v11 = vadd.f32 %v1137_v2, %v1075_v10  ;;  %v2012_v10 = vld [vmem:[%s2296_s17 + $0x20] sm:$0xff] }
  0xc4   : > { %1290 = vmatpush.bf16.msrb.mxu1 %v2012_v10 }
  0xc5   : > { %v1016_v18 = vpop.f32.mrf.mxu2 }
  0xc6   : > { %v923_v13 = vpop.f32.mrf.mxu0  ;;  %v973_v14 = vpop.f32.mrf.mxu1  ;;  %v2304_v20 = vadd.f32 %v2247_v34, %v1016_v18 }
  0xc7   : > { %v924_v15 = vadd.f32 %v2247_v34, %v923_v13  ;;  %v2301_v16 = vadd.f32 %v2247_v34, %v973_v14  ;;  %v2350_v18 = vpop.f32.mrf.mxu3 }
  0xc9   : > { %v1076_v17 = vmax.f32 %v924_v15, 0.0 }
  0xcb   : > { %v1139_v19 = vadd.f32 %v1138_v11, %v1076_v17 }
  0xcd   : > { %v2315_v35 = vpop.f32.mrf.mxu2 }
  0xce   : > { %v926_v21 = vpop.f32.mrf.mxu0  ;;  %v976_v22 = vpop.f32.mrf.mxu1 }
  0xcf   : > { %v927_v23 = vadd.f32 %v2247_v34, %v926_v21  ;;  %v2308_v24 = vadd.f32 %v2247_v34, %v976_v22 }
  0xd1   : > { %v1077_v25 = vmax.f32 %v927_v23, 0.0 }
  0xd3   : > { %v1140_v26 = vadd.f32 %v1139_v19, %v1077_v25 }
  0xd5   : > { %v2325_v48 = vpop.f32.mrf.mxu2 }
  0xd6   : > { %v928_v27 = vpop.f32.mrf.mxu0  ;;  %v978_v28 = vpop.f32.mrf.mxu1 }
  0xd7   : > { %v929_v29 = vadd.f32 %v2247_v34, %v928_v27  ;;  %v2312_v30 = vadd.f32 %v2247_v34, %v978_v28 }
  0xd9   : > { %v1078_v31 = vmax.f32 %v929_v29, 0.0 }
  0xdb   : > { %v1141_v32 = vadd.f32 %v1140_v26, %v1078_v31  ;;  %v2356_v31 = vpop.f32.mrf.mxu3 }
  0xdd   : > { %v2332_v60 = vpop.f32.mrf.mxu2 }
  0xde   : > { %v931_v36 = vpop.f32.mrf.mxu0  ;;  %v981_v37 = vpop.f32.mrf.mxu1 }
  0xdf   : > { %v932_v38 = vadd.f32 %v2247_v34, %v931_v36  ;;  %v2319_v39 = vadd.f32 %v2247_v34, %v981_v37 }
  0xe1   : > { %v1079_v41 = vmax.f32 %v932_v38, 0.0 }
  0xe3   : > { %v1142_v42 = vadd.f32 %v1141_v32, %v1079_v41 }
  0xe5   : > { %v2342_v6 = vpop.f32.mrf.mxu2 }
  0xe6   : > { %v933_v43 = vpop.f32.mrf.mxu0  ;;  %v983_v44 = vpop.f32.mrf.mxu1 }
  0xe7   : > { %v934_v45 = vadd.f32 %v2247_v34, %v933_v43  ;;  %v2323_v47 = vadd.f32 %v2247_v34, %v983_v44  ;;  %v2361_v43 = vpop.f32.mrf.mxu3 }
  0xe9   : > { %v1080_v49 = vmax.f32 %v934_v45, 0.0 }
  0xeb   : > { %v1143_v51 = vadd.f32 %v1142_v42, %v1080_v49 }
  0xed   : > { %v2348_v17 = vpop.f32.mrf.mxu2 }
  0xee   : > { %v936_v53 = vpop.f32.mrf.mxu0  ;;  %v986_v54 = vpop.f32.mrf.mxu1 }
  0xef   : > { %v937_v56 = vadd.f32 %v2247_v34, %v936_v53  ;;  %v2330_v58 = vadd.f32 %v2247_v34, %v986_v54 }
  0xf1   : > { %v1081_v59 = vmax.f32 %v937_v56, 0.0 }
  0xf3   : > { %v1144_v61 = vadd.f32 %v1143_v51, %v1081_v59 }
  0xf5   : > { %v2354_v29 = vpop.f32.mrf.mxu2 }
  0xf6   : > { %v938_v62 = vpop.f32.mrf.mxu0  ;;  %v988_v0 = vpop.f32.mrf.mxu1 }
  0xf7   : > { %v939_v1 = vadd.f32 %v2247_v34, %v938_v62  ;;  %v2340_v2 = vadd.f32 %v2247_v34, %v988_v0 }
  0xf9   : > { %v1082_v4 = vmax.f32 %v939_v1, 0.0 }
  0xfb   : > { %v1145_v5 = vadd.f32 %v1144_v61, %v1082_v4 }
  0xfd   : > { %v2359_v42 = vpop.f32.mrf.mxu2 }
  0xfe   : > { %v941_v11 = vpop.f32.mrf.mxu0  ;;  %v991_v12 = vpop.f32.mrf.mxu1 }
  0xff   : > { %v942_v13 = vadd.f32 %v2247_v34, %v941_v11  ;;  %v992_v49 = vadd.f32 %v2247_v34, %v991_v12  ;;  %v2369_v12 = vpop.f32.mrf.mxu3 }
 0x101   : > { %v1083_v14 = vmax.f32 %v942_v13, 0.0  ;;  %v1103_v61 = vmax.f32 %v992_v49, 0.0  ;;  %v1111_v49 = vmax.f32 %v2280_v3, 0.0 }
 0x103   : > { %v1146_v15 = vadd.f32 %v1145_v5, %v1083_v14 }
 0x105   : > { %v1036_v11 = vpop.f32.mrf.mxu2 }
 0x106   : > { %v943_v19 = vpop.f32.mrf.mxu0  ;;  %v993_v21 = vpop.f32.mrf.mxu1 }
 0x107   : > { %v944_v22 = vadd.f32 %v2247_v34, %v943_v19  ;;  %v994_v44 = vadd.f32 %v2247_v34, %v993_v21 }
 0x109   : > { %v1084_v23 = vmax.f32 %v944_v22, 0.0  ;;  %v1104_v54 = vmax.f32 %v994_v44, 0.0 }
 0x10b   : > { %v1147_v25 = vadd.f32 %v1146_v15, %v1084_v23  ;;  %v1172_v4 = vadd.f32 %v1104_v54, %v1103_v61  ;;  %v2011_v15 = vld [vmem:[%s2296_s17 + $0x18] sm:$0xff]  ;;  %v1019_v54 = vadd.f32 %v2247_v34, %v2315_v35  ;;  %v1022_v61 = vadd.f32 %v2247_v34, %v2325_v48 }
 0x10c   : > { %1291 = vmatpush.bf16.msrb.mxu1 %v2011_v15  ;;  %v1027_v35 = vadd.f32 %v2247_v34, %v2342_v6  ;;  %v1029_v15 = vadd.f32 %v2247_v34, %v2348_v17  ;;  %v1093_v17 = vmax.f32 %v2269_v55, 0.0 }
 0x10d   : > { %v1114_v3 = vmax.f32 %v1019_v54, 0.0 }
 0x10e   : > { %v946_v26 = vpop.f32.mrf.mxu0  ;;  %v996_v27 = vpop.f32.mrf.mxu1 }
 0x10f   : > { %v947_v28 = vadd.f32 %v2247_v34, %v946_v26  ;;  %v997_v51 = vadd.f32 %v2247_v34, %v996_v27 }
 0x111   : > { %v1085_v32 = vmax.f32 %v947_v28, 0.0  ;;  %v1105_v62 = vmax.f32 %v997_v51, 0.0 }
 0x113   : > { %v1148_v33 = vadd.f32 %v1147_v25, %v1085_v32  ;;  %v1173_v13 = vadd.f32 %v1172_v4, %v1105_v62  ;;  %v1109_v32 = vmax.f32 %v2264_v50, 0.0 }
 0x116   : > { %v948_v36 = vpop.f32.mrf.mxu0  ;;  %v998_v37 = vpop.f32.mrf.mxu1 }
 0x117   : > { %v949_v38 = vadd.f32 %v2247_v34, %v948_v36  ;;  %v999_v56 = vadd.f32 %v2247_v34, %v998_v37  ;;  %v1110_v37 = vmax.f32 %v2272_v57, 0.0  ;;  %v1113_v57 = vmax.f32 %v2304_v20, 0.0 }
 0x119   : > { %v1086_v41 = vmax.f32 %v949_v38, 0.0  ;;  %v1106_v5 = vmax.f32 %v999_v56, 0.0 }
 0x11b   : > { %v1149_v45 = vadd.f32 %v1148_v33, %v1086_v41  ;;  %v1174_v22 = vadd.f32 %v1173_v13, %v1106_v5  ;;  %v1038_v41 = vpop.f32.mrf.mxu2  ;;  %v1115_v5 = vmax.f32 %v1022_v61, 0.0 }
 0x11e   : > { %v951_v52 = vpop.f32.mrf.mxu0  ;;  %v1001_v53 = vpop.f32.mrf.mxu1 }
 0x11f   : > { %v952_v59 = vadd.f32 %v2247_v34, %v951_v52  ;;  %v1002_v1 = vadd.f32 %v2247_v34, %v1001_v53  ;;  %v1112_v53 = vmax.f32 %v2290_v9, 0.0 }
 0x121   : > { %v1087_v0 = vmax.f32 %v952_v59, 0.0  ;;  %v1107_v14 = vmax.f32 %v1002_v1, 0.0  ;;  %v2010_v59 = vld [vmem:[%s2296_s17 + $0x10] sm:$0xff]  ;;  %v1024_v1 = vadd.f32 %v2247_v34, %v2332_v60  ;;  %v1091_v60 = vmax.f32 %v2253_v40, 0.0 }
 0x122   : > { %1292 = vmatpush.bf16.msrb.mxu1 %v2010_v59  ;;  %v1037_v40 = vadd.f32 %v2247_v34, %v1036_v11  ;;  %v1096_v11 = vmax.f32 %v2301_v16, 0.0 }
 0x123   : > { %v1150_v10 = vadd.f32 %v1149_v45, %v1087_v0  ;;  %v1175_v26 = vadd.f32 %v1174_v22, %v1107_v14  ;;  %v2376_v45 = vpop.f32.mrf.mxu3  ;;  %v1041_v20 = vpop.f32.mrf.mxu2  ;;  %v1116_v48 = vmax.f32 %v1024_v1, 0.0  ;;  %v1117_v22 = vmax.f32 %v1027_v35, 0.0 }
 0x124   : > { %v1042_v59 = vadd.f32 %v2247_v34, %v1041_v20 }
 0x126   : > { %v953_v19 = vpop.f32.mrf.mxu0  ;;  %v1003_v21 = vpop.f32.mrf.mxu1  ;;  %v1123_v1 = vmax.f32 %v1042_v59, 0.0 }
 0x127   : > { %v954_v23 = vadd.f32 %v2247_v34, %v953_v19  ;;  %v1004_v25 = vadd.f32 %v2247_v34, %v1003_v21 }
 0x129   : > { %v1088_v27 = vmax.f32 %v954_v23, 0.0  ;;  %v1108_v28 = vmax.f32 %v1004_v25, 0.0  ;;  %v1032_v23 = vadd.f32 %v2247_v34, %v2354_v29  ;;  %v1094_v29 = vmax.f32 %v2277_v63, 0.0 }
 0x12b   : > { %v1151_v33 = vadd.f32 %v1150_v10, %v1088_v27  ;;  %v1176_v36 = vadd.f32 %v1175_v26, %v1108_v28  ;;  %v2392_v14 = vpop.f32.mrf.mxu3  ;;  %v1092_v26 = vmax.f32 %v2260_v46, 0.0  ;;  %v1118_v27 = vmax.f32 %v1029_v15, 0.0 }
 0x12c   : > { %v1034_v28 = vadd.f32 %v2247_v34, %v2359_v42  ;;  %v1039_v46 = vadd.f32 %v2247_v34, %v1038_v41  ;;  %v1095_v42 = vmax.f32 %v2287_v7, 0.0  ;;  %v1097_v41 = vmax.f32 %v2308_v24, 0.0 }
 0x12d   : > { %v1177_v38 = vadd.f32 %v1176_v36, %v1109_v32  ;;  %v2009_v36 = vld [vmem:[%s2296_s17 + $0x8] sm:$0xff]  ;;  %v1047_v7 = vadd.f32 %v2247_v34, %v2344_v8  ;;  %v1052_v24 = vadd.f32 %v2247_v34, %v2356_v31  ;;  %v2008_v8 = vld [vmem:[%s2296_s17] sm:$0xff]  ;;  %v1100_v15 = vmax.f32 %v2323_v47, 0.0 }
 0x12e   : > { %v956_v44 = vpop.f32.mrf.mxu0  ;;  %1293 = vmatpush.bf16.msrb.mxu1 %v2009_v36  ;;  %v1122_v61 = vmax.f32 %v1039_v46, 0.0  ;;  %v1057_v31 = vadd.f32 %v2247_v34, %v2369_v12 }
 0x12f   : > { %v1178_v51 = vadd.f32 %v1177_v38, %v1110_v37  ;;  %v957_v52 = vadd.f32 %v2247_v34, %v956_v44  ;;  %v1119_v37 = vmax.f32 %v1032_v23, 0.0 }
 0x131   : > { %v1179_v50 = vadd.f32 %v1178_v51, %v1111_v49  ;;  %v1089_v56 = vmax.f32 %v957_v52, 0.0  ;;  %v1120_v49 = vmax.f32 %v1034_v28, 0.0 }
 0x132   : > { %1294 = vmatpush.bf16.msrb.mxu1 %v2008_v8  ;;  %v2029_v8 = vld [vmem:[%s534_s29 + $0x28] sm:$0xff] }
 0x133   : > { %v1180_v62 = vadd.f32 %v1179_v50, %v1112_v53  ;;  %v1152_v0 = vadd.f32 %v1151_v33, %v1089_v56  ;;  %v1043_v53 = vpop.f32.mrf.mxu2  ;;  %v1063_v54 = vpop.f32.mrf.mxu3  ;;  %v1121_v50 = vmax.f32 %v1037_v40, 0.0  ;;  %v2022_v40 = vld [vmem:[%s2434_s23 + $0x30] sm:$0xff] }
 0x134   : > { %v1044_v63 = vadd.f32 %v2247_v34, %v1043_v53 }
 0x135   : > { %v1181_v4 = vadd.f32 %v1180_v62, %v1113_v57 }
 0x136   : > { %v958_v9 = vpop.f32.mrf.mxu0  ;;  %v1124_v35 = vmax.f32 %v1044_v63, 0.0 }
 0x137   : > { %v1182_v10 = vadd.f32 %v1181_v4, %v1114_v3  ;;  %v959_v13 = vadd.f32 %v2247_v34, %v958_v9  ;;  %v1098_v4 = vmax.f32 %v2312_v30, 0.0  ;;  %v1049_v9 = vadd.f32 %v2247_v34, %v2350_v18 }
 0x138   : > { %v1054_v18 = vadd.f32 %v2247_v34, %v2361_v43  ;;  %v1062_v43 = vadd.f32 %v2247_v34, %v2392_v14 }
 0x139   : > { %v1183_v19 = vadd.f32 %v1182_v10, %v1115_v5  ;;  %v1090_v21 = vmax.f32 %v959_v13, 0.0  ;;  %v1099_v10 = vmax.f32 %v2319_v39, 0.0  ;;  %v1125_v13 = vmax.f32 %v1047_v7, 0.0 }
 0x13a   : > { %v1126_v30 = vmax.f32 %v1049_v9, 0.0  ;;  %v1101_v39 = vmax.f32 %v2330_v58, 0.0  ;;  %v1128_v47 = vmax.f32 %v1054_v18, 0.0  ;;  %v1129_v58 = vmax.f32 %v1057_v31, 0.0  ;;  %v2067_v18 = vld [vmem:[%s521_s20] ss:$0 sm:$0xff]  ;;  %s537_s20 = scalar_lea.vmem %s2495_s8, %s2503_s13 }
 0x13b   : > { %v1184_v6 = vadd.f32 %v1183_v19, %v1116_v48  ;;  %v1153_v25 = vadd.f32 %v1152_v0, %v1090_v21  ;;  %v1066_v19 = vpop.f32.mrf.mxu3 }
 0x13d   : > { %v1185_v32 = vadd.f32 %v1184_v6, %v1117_v22  ;;  %v1154_v33 = vadd.f32 %v1153_v25, %v1091_v60  ;;  %v1127_v22 = vmax.f32 %v1052_v24, 0.0  ;;  %v1102_v25 = vmax.f32 %v2340_v2, 0.0  ;;  %v2023_v2 = vld [vmem:[%s2434_s23 + $0x38] sm:$0xff] }
 0x13e   : > { %1370 = vmatpush.bf16.msrb.mxu2 %v2023_v2 }
 0x13f   : > { %v1186_v38 = vadd.f32 %v1185_v32, %v1118_v27  ;;  %v1155_v44 = vadd.f32 %v1154_v33, %v1092_v26  ;;  %v1059_v26 = vadd.f32 %v2247_v34, %v2376_v45  ;;  %v1064_v45 = vadd.f32 %v2247_v34, %v1063_v54 }
 0x141   : > { %v1187_v51 = vadd.f32 %v1186_v38, %v1119_v37  ;;  %v1156_v52 = vadd.f32 %v1155_v44, %v1093_v17  ;;  %v1130_v33 = vmax.f32 %v1059_v26, 0.0  ;;  %v1131_v38 = vmax.f32 %v1062_v43, 0.0 }
 0x142   : > { %1371 = vmatpush.bf16.msrb.mxu2 %v2022_v40 }
 0x143   : > { %v1188_v56 = vadd.f32 %v1187_v51, %v1120_v49  ;;  %v1157_v55 = vadd.f32 %v1156_v52, %v1094_v29  ;;  %v1068_v37 = vpop.f32.mrf.mxu3  ;;  %v1067_v29 = vadd.f32 %v2247_v34, %v1066_v19  ;;  %v1132_v51 = vmax.f32 %v1064_v45, 0.0  ;;  %v2021_v52 = vld [vmem:[%s2434_s23 + $0x28] sm:$0xff]  ;;  %v2027_v19 = vld [vmem:[%s534_s29 + $0x18] sm:$0xff] }
 0x144   : > { %v1069_v46 = vadd.f32 %v2247_v34, %v1068_v37 }
 0x145   : > { %v1189_v57 = vadd.f32 %v1188_v56, %v1121_v50  ;;  %v1158_v62 = vadd.f32 %v1157_v55, %v1095_v42  ;;  %v1133_v53 = vmax.f32 %v1067_v29, 0.0  ;;  %v2020_v55 = vld [vmem:[%s2434_s23 + $0x20] sm:$0xff] }
 0x146   : > { %v1134_v56 = vmax.f32 %v1069_v46, 0.0  ;;  %1372 = vmatpush.bf16.msrb.mxu2 %v2021_v52 }
 0x147   : > { %v1190_v0 = vadd.f32 %v1189_v57, %v1122_v61  ;;  %v1159_v3 = vadd.f32 %v1158_v62, %v1096_v11  ;;  %v2019_v61 = vld [vmem:[%s2434_s23 + $0x18] sm:$0xff] }
 0x149   : > { %v1160_v16 = vadd.f32 %v1159_v3, %v1097_v41  ;;  %v1191_v5 = vadd.f32 %v1190_v0, %v1123_v1  ;;  %v2018_v41 = vld [vmem:[%s2434_s23 + $0x10] sm:$0xff]  ;;  %v2017_v1 = vld [vmem:[%s2434_s23 + $0x8] sm:$0xff] }
 0x14a   : > { %1373 = vmatpush.bf16.msrb.mxu2 %v2020_v55 }
 0x14b   : > { %v1161_v20 = vadd.f32 %v1160_v16, %v1098_v4  ;;  %v1192_v48 = vadd.f32 %v1191_v5, %v1124_v35  ;;  %v2016_v5 = vld [vmem:[%s2434_s23] sm:$0xff] }
 0x14d   : > { %v1162_v21 = vadd.f32 %v1161_v20, %v1099_v10  ;;  %v1193_v60 = vadd.f32 %v1192_v48, %v1125_v13  ;;  %v2031_v20 = vld [vmem:[%s534_s29 + $0x38] sm:$0xff]  ;;  %v2030_v48 = vld [vmem:[%s534_s29 + $0x30] sm:$0xff] }
 0x14e   : > { %1374 = vmatpush.bf16.msrb.mxu2 %v2019_v61  ;;  %1453 = vmatpush.bf16.msrb.mxu3 %v2031_v20 }
 0x14f   : > { %v1194_v23 = vadd.f32 %v1193_v60, %v1126_v30  ;;  %v1163_v6 = vadd.f32 %v1162_v21, %v1100_v15  ;;  %v2028_v15 = vld [vmem:[%s534_s29 + $0x20] sm:$0xff]  ;;  %v2026_v30 = vld [vmem:[%s534_s29 + $0x10] sm:$0xff]  ;;  %v2025_v21 = vld [vmem:[%s534_s29 + $0x8] sm:$0xff] }
 0x151   : > { %v1195_v27 = vadd.f32 %v1194_v23, %v1127_v22  ;;  %v1164_v28 = vadd.f32 %v1163_v6, %v1101_v39  ;;  %v2024_v22 = vld [vmem:[%s534_s29] sm:$0xff] }
 0x152   : > { %1375 = vmatpush.bf16.msrb.mxu2 %v2018_v41  ;;  %1454 = vmatpush.bf16.msrb.mxu3 %v2030_v48  ;;  %v2068_v6 = vld [vmem:[%s529_s26] ss:$0 sm:$0xff] }
 0x153   : > { %v1196_v12 = vadd.f32 %v1195_v27, %v1128_v47  ;;  %v1165_v32 = vadd.f32 %v1164_v28, %v1102_v25 }
 0x155   : > { %v1197_v36 = vadd.f32 %v1196_v12, %v1129_v58  ;;  %v1166_v17 = vrot.slane %v1165_v32, 4  ;;  %v2069_v58 = vld [vmem:[%s537_s20] ss:$0 sm:$0xff] }
 0x156   : > { %1376 = vmatpush.bf16.msrb.mxu2 %v2017_v1  ;;  %1455 = vmatpush.bf16.msrb.mxu3 %v2029_v8 }
 0x157   : > { %v1198_v44 = vadd.f32 %v1197_v36, %v1130_v33  ;;  %v1167_v49 = vadd.f32 %v1166_v17, %v1165_v32 }
 0x159   : > { %v1199_v14 = vadd.f32 %v1198_v44, %v1131_v38  ;;  %v1168_v54 = vrot.slane %v1167_v49, 2 }
 0x15a   : > { %1377 = vmatpush.bf16.msrb.mxu2 %v2016_v5  ;;  %1456 = vmatpush.bf16.msrb.mxu3 %v2028_v15 }
 0x15b   : > { %v1200_v42 = vadd.f32 %v1199_v14, %v1132_v51  ;;  %v1169_v11 = vadd.f32 %v1168_v54, %v1167_v49 }
 0x15d   : > { %v1201_v50 = vadd.f32 %v1200_v42, %v1133_v53  ;;  %v1170_v63 = vrot.slane %v1169_v11, 1 }
 0x15e   : > { %1457 = vmatpush.bf16.msrb.mxu3 %v2027_v19 }
 0x15f   : > { %v1202_v59 = vadd.f32 %v1201_v50, %v1134_v56  ;;  %v1171_v0 = vadd.f32 %v1170_v63, %v1169_v11 }
 0x161   : > { %v1203_v57 = vrot.slane %v1202_v59, 4  ;;  %v1209_v9 = vpack.c.bf16 %v1171_v0, %v1171_v0 }
 0x162   : > { %1458 = vmatpush.bf16.msrb.mxu3 %v2026_v30 }
 0x163   : > { %v1204_v62 = vadd.f32 %v1203_v57, %v1202_v59  ;;  %v1233_v35 = vunpack.c.l.b16 %v1209_v9 }
 0x165   : > { %v1205_v34 = vrot.slane %v1204_v62, 2 }
 0x166   : > { %1459 = vmatpush.bf16.msrb.mxu3 %v2025_v21 }
 0x167   : > { %v1206_v7 = vadd.f32 %v1205_v34, %v1204_v62 }
 0x169   : > { %v1207_v3 = vrot.slane %v1206_v7, 1 }
 0x16a   : > { %1460 = vmatpush.bf16.msrb.mxu3 %v2024_v22 }
 0x16b   : > { %v1208_v4 = vadd.f32 %v1207_v3, %v1206_v7 }
 0x16d   : > { %v1210_v16 = vpack.c.bf16 %v1208_v4, %v1208_v4 }
 0x16f   : > { %v1234_v10 = vunpack.c.l.b16 %v1210_v16 }
 0x171   : > { %v1236_v13 = vsel %vm1235_vm2, %v1234_v10, %v1233_v35 }
 0x172   : > { %v1237_v24 = vpack.c.b16 %v1236_v13, %v1236_v13 }
 0x174   : > { %1295 = vmatmul.bf16.vlgmr.msrb.gmra.mxu1 %v1237_v24 }
 0x1f1   : > { %v1296_v60 = vpop.f32.mrf.mxu1 }
 0x1f2   : > { %v1297_v39 = vadd.f32 %v2067_v18, %v1296_v60 }
 0x1f4   : > { %1300 = vst [vmem:[%s544_s19] sm:$0x3] %v1297_v39  ;;  %v1301_v31 = vpack.c.bf16 %v1297_v39, %v1297_v39 }
 0x1f6   : > { %1378 = vmatmul.bf16.vlgmr.msrb.gmra.mxu2 %v1301_v31 }
 0x1f9   : > { %v1298_v23 = vpop.f32.mrf.mxu1 }
 0x279   : > { %v1379_v25 = vpop.f32.mrf.mxu2 }
 0x27a   : > { %v1380_v47 = vadd.f32 %v2068_v6, %v1379_v25 }
 0x27c   : > { %v1383_v26 = vmax.f32 %v1380_v47, 0.0 }
 0x27e   : > { %v1384_v27 = vpack.c.bf16 %v1383_v26, %v1383_v26 }
 0x280   : > { %1461 = vmatmul.bf16.vlgmr.msrb.gmra.mxu3 %v1384_v27 }
 0x281   : > { %v1381_v28 = vpop.f32.mrf.mxu2 }
 0x303   : > { %v1462_v43 = vpop.f32.mrf.mxu3 }
 0x304   : > { %v1463_v12 = vadd.f32 %v2069_v58, %v1462_v43 }
 0x306   : > { %v1466_v32 = vmul.f32 %v1463_v12, %v1463_v12 }
 0x308   : > { %v1467_v2 = vsel %vm898_vm0, %v1466_v32, 0.0 }
 0x309   : > { %1468 = vadd.xlane.f32.xlu0 %v1467_v2 }
 0x30b   : > { %v1464_v33 = vpop.f32.mrf.mxu3 }
 0x37c   : > { %v1469_v45 = vpop.xlane.xlu0 %1468 }
 0x37d   : > { %v1470_v36 = vmax.f32 %v1469_v45, 1e-24 }
 0x37f   : > { %2070 = vrsqrt.f32 %v1470_v36  ;;  %vm1477_vm4 = vweird.f32 %v1470_v36 }
 0x385   : > { %v2071_v17 = vpop.eup %2070 }
 0x386   : > { %v1472_v37 = vmul.f32 %v2071_v17, %v1470_v36  ;;  %vm1478_vm3 = vweird.f32 %v2071_v17 }
 0x387   : > { %vm1479_vm5 = vmor %vm1477_vm4, %vm1478_vm3 }
 0x388   : > { %v1473_v40 = vmul.f32 %v2071_v17, %v1472_v37 }
 0x38a   : > { %v1474_v38 = vmul.f32 0.5, %v1473_v40 }
 0x38c   : > { %v1475_v44 = vsub.f32 1.5, %v1474_v38 }
 0x38e   : > { %v1476_v29 = vmul.f32 %v2071_v17, %v1475_v44 }
 0x390   : > { %v1480_v49 = vsel %vm1479_vm5, %v2071_v17, %v1476_v29 }
 0x391   : > { %v1481_v51 = vmul.f32 %v1480_v49, %v1463_v12 }
 0x393   : > { %1482 = vst [vmem:[%s551_s25] sm:$0x3] %v1481_v51 }
 0x394 PF: > { %s21_s15 = sadd.s32 1, %s2094_s15   ;;  %s2498_s13 = smov %s2090_s14 }
 0x395   : > { %p18_p5 = scmp.ge.s32.totalorder %s21_s15, 4   ;;  %s2499_s14 = smov %s2501_s16 }
 0x397   :  { %20 = sbr.rel (!%p18_p5) target bundleno = 2 (0x2), region = 122 }

</bundles_post_ra>
